<compile_context>
chip_gen: v6e
topology: v6e:2x2x1
jax: 0.10.0
libtpu: 0.0.40
codegen_flags: <defaults>
</compile_context>

<pallas_src>
import jax
import jax.numpy as jnp
from jax.experimental import pallas as pl
from jax.experimental.pallas import tpu as pltpu


def _round_up(x, m):
    return (x + m - 1) // m * m


def _cdiv(a, b):
    return (a + b - 1) // b


def _masked_sqerr_kernel(x_ref, y_ref, m_ref, out_ref):
    # x_ref, y_ref : VMEM (TR, D)     input / target row tile (any float dtype)
    # m_ref        : VMEM (TR, 1)     f32 row-validity mask (1.0 valid, 0.0 pad)
    # out_ref      : VMEM (1, 1, D)   f32 per-lane partial sums for this tile
    x = x_ref[...].astype(jnp.float32)
    y = y_ref[...].astype(jnp.float32)
    m = m_ref[...]                       # (TR, 1), lane-broadcast in the select
    d = x - y
    sq = d * d
    # Use where (not multiply) so unspecified OOB contents of the last partial
    # row block (possibly NaN/Inf) cannot leak into the sum.
    masked = jnp.where(m > 0.0, sq, 0.0)
    # Bulk of the reduction is VPU sublane adds + one XLU fold per block; the
    # final tiny reduce happens in the wrapper.
    out_ref[...] = jnp.sum(masked, axis=0, keepdims=True)[None]


def _tpu_plan():
    """Returns (per-input block bytes, VMEM working-set budget, vmem_limit)."""
    try:
        kind = jax.devices()[0].device_kind.lower()
    except Exception:
        kind = ""
    if "v7" in kind or "tpu7" in kind:
        # v7x: fast HBM makes per-step overhead relatively large -> bigger
        # blocks, but the budget keeps 2 inputs x 2 buffers + mask << 64 MiB/TC.
        return 8 << 20, 40 << 20, 48 << 20
    if "v6" in kind:
        return 4 << 20, 24 << 20, 32 << 20
    # v5e (and older/unknown): modest blocks; the explicit vmem_limit matters
    # because the scoped default is only 16 MiB.
    return 2 << 20, 20 << 20, 32 << 20


def masked_mse(inputs, targets, lengths):
    """inputs, targets: (B, T, D); lengths: (B,) int. Returns scalar f32 loss."""
    B, T, D = inputs.shape
    assert targets.shape == inputs.shape
    lengths = lengths.astype(jnp.int32)

    R = B * T
    itemsize = jnp.dtype(inputs.dtype).itemsize
    Dp = _round_up(max(D, 1), 128)            # lane-padded width a block occupies in VMEM

    block_bytes, vmem_budget, vmem_limit = _tpu_plan()

    # Per-row VMEM cost of the double-buffered working set:
    #   x + y blocks (input dtype, lane-padded to Dp) + (TR, 1) f32 mask blocks
    #   (lane-padded to 128).
    per_row_vmem = 2 * 2 * Dp * itemsize + 2 * 128 * 4
    tr_from_bytes = block_bytes // (Dp * itemsize)
    tr_from_vmem = vmem_budget // per_row_vmem
    tr_target = max(8, (min(tr_from_bytes, tr_from_vmem) // 8) * 8)

    # Balanced row tiles: last block is never mostly padding.
    nb = _cdiv(R, tr_target)
    TR = _round_up(_cdiv(R, nb), 8)
    num_blocks = _cdiv(R, TR)
    # Give v7x megacore at least two tiles to shard when the input allows it
    # (harmless single extra grid step on 1-TC chips).
    if num_blocks < 2 and R > 8:
        TR = _round_up(_cdiv(R, 2), 8)
        num_blocks = _cdiv(R, TR)
    R_pad = num_blocks * TR

    # Inputs/targets go in unpadded (the (B*T, D) reshape is free).  Only the
    # tiny per-row mask is materialized and zero-padded to R_pad rows so the
    # kernel can mask both invalid timesteps and OOB rows of the last block.
    x = inputs.reshape(R, D)
    y = targets.reshape(R, D)
    mask_rows = (jnp.arange(T, dtype=jnp.int32)[None, :] < lengths[:, None])
    mask_rows = mask_rows.astype(jnp.float32).reshape(R, 1)
    mask_rows = jnp.pad(mask_rows, ((0, R_pad - R), (0, 0)))

    partials = pl.pallas_call(
        _masked_sqerr_kernel,
        out_shape=jax.ShapeDtypeStruct((num_blocks, 1, D), jnp.float32),
        grid=(num_blocks,),
        in_specs=[
            pl.BlockSpec((TR, D), lambda i: (i, 0)),
            pl.BlockSpec((TR, D), lambda i: (i, 0)),
            pl.BlockSpec((TR, 1), lambda i: (i, 0)),
        ],
        out_specs=pl.BlockSpec((1, 1, D), lambda i: (i, 0, 0)),
        compiler_params=pltpu.CompilerParams(
            dimension_semantics=("parallel",),   # shard row tiles across TCs (v7x)
            vmem_limit_bytes=vmem_limit,
        ),
    )(x, y, mask_rows)

    numerator = jnp.sum(partials)
    # mask.sum(); clip so negative lengths contribute 0 valid rows (as in torch).
    denominator = jnp.sum(jnp.clip(lengths, 0, T)).astype(jnp.float32)
    return numerator / denominator


def _masked_mse_ref(inputs, targets, lengths):
    B, T, D = inputs.shape
    mask = (jnp.arange(T)[None, :] < lengths[:, None]).astype(jnp.float32)[:, :, None]
    diff = (inputs - targets) * mask
    return jnp.sum(diff * diff) / jnp.sum(mask)


if __name__ == "__main__":
    key = jax.random.PRNGKey(0)
    k1, k2, k3, k4 = jax.random.split(key, 4)

    # Test 1: shapes implied by the module (T == lengths.max()).
    B, T, D = 2, 8, 32
    x = jax.random.normal(k1, (B, T, D), dtype=jnp.float32)
    y = jax.random.normal(k2, (B, T, D), dtype=jnp.float32)
    lengths = jnp.array([5, 8], dtype=jnp.int32)
    loss = masked_mse(x, y, lengths)
    jax.block_until_ready(loss)
    ref = _masked_mse_ref(x, y, lengths)
    assert jnp.allclose(loss, ref, rtol=1e-5, atol=1e-5), (loss, ref)

    # Test 2: non-128-multiple D, ragged row count (partial last block), zero length.
    B2, T2, D2 = 3, 7, 130
    x2 = jax.random.normal(k3, (B2, T2, D2), dtype=jnp.float32)
    y2 = jax.random.normal(k4, (B2, T2, D2), dtype=jnp.float32)
    lengths2 = jnp.array([0, 7, 3], dtype=jnp.int32)
    loss2 = masked_mse(x2, y2, lengths2)
    jax.block_until_ready(loss2)
    ref2 = _masked_mse_ref(x2, y2, lengths2)
    assert jnp.allclose(loss2, ref2, rtol=1e-5, atol=1e-5), (loss2, ref2)

    print("KERNEL_OK")
</pallas_src>

<mosaic_0001>
module attributes {stable_mosaic.version = 11 : i64} {
  func.func @_masked_sqerr_kernel(%arg0: i32, %arg1: memref<8x32xf32, #tpu.memory_space<vmem>>, %arg2: memref<8x32xf32, #tpu.memory_space<vmem>>, %arg3: memref<8x1xf32, #tpu.memory_space<vmem>>, %arg4: memref<1x1x32xf32, #tpu.memory_space<vmem>>) attributes {dimension_semantics = [#tpu.dimension_semantics<parallel>], iteration_bounds = array<i64: 2>, scalar_prefetch = 0 : i64, scratch_operands = 0 : i64, tpu.core_type = #tpu.core_type<tc>, window_params = [{transform_indices = @transform_0, window_bounds = array<i64: 8, 32>}, {transform_indices = @transform_1, window_bounds = array<i64: 8, 32>}, {transform_indices = @transform_2, window_bounds = array<i64: 8, 1>}, {transform_indices = @transform_3, window_bounds = array<i64: 1, 1, 32>}]} {
    %c0 = arith.constant 0 : index
    %c0_0 = arith.constant 0 : index
    %0 = vector.load %arg1[%c0, %c0_0] : memref<8x32xf32, #tpu.memory_space<vmem>>, vector<8x32xf32>
    %c0_1 = arith.constant 0 : index
    %c0_2 = arith.constant 0 : index
    %1 = vector.load %arg2[%c0_1, %c0_2] : memref<8x32xf32, #tpu.memory_space<vmem>>, vector<8x32xf32>
    %c0_3 = arith.constant 0 : index
    %c0_4 = arith.constant 0 : index
    %2 = vector.load %arg3[%c0_3, %c0_4] : memref<8x1xf32, #tpu.memory_space<vmem>>, vector<8x1xf32>
    %3 = arith.subf %0, %1 : vector<8x32xf32>
    %4 = arith.mulf %3, %3 : vector<8x32xf32>
    %cst = arith.constant 0.000000e+00 : f32
    %5 = vector.broadcast %cst : f32 to vector<8x1xf32>
    %6 = arith.cmpf ogt, %2, %5 : vector<8x1xf32>
    %cst_5 = arith.constant 0.000000e+00 : f32
    %7 = vector.shape_cast %6 : vector<8x1xi1> to vector<8x1xi1>
    %8 = vector.broadcast %7 : vector<8x1xi1> to vector<8x32xi1>
    %9 = vector.broadcast %cst_5 : f32 to vector<8x32xf32>
    %10 = arith.select %8, %4, %9 : vector<8x32xi1>, vector<8x32xf32>
    %cst_6 = arith.constant dense<0.000000e+00> : vector<32xf32>
    %11 = vector.multi_reduction <add>, %10, %cst_6 [0] : vector<8x32xf32> to vector<32xf32>
    %12 = vector.shape_cast %11 : vector<32xf32> to vector<1x32xf32>
    %13 = vector.shape_cast %12 : vector<1x32xf32> to vector<1x1x32xf32>
    %c0_7 = arith.constant 0 : index
    %c0_8 = arith.constant 0 : index
    %c0_9 = arith.constant 0 : index
    %14 = vector.load %arg4[%c0_7, %c0_8, %c0_9] : memref<1x1x32xf32, #tpu.memory_space<vmem>>, vector<1x1x32xf32>
    tpu.vector_store %arg4[%c0_7, %c0_8, %c0_9], %13 {strides = array<i32>} : memref<1x1x32xf32, #tpu.memory_space<vmem>>, vector<1x1x32xf32>,
    return
  }
  func.func @transform_0(%arg0: i32) -> (i32, i32) {
    %c0_i32 = arith.constant 0 : i32
    %c0_i32_0 = arith.constant 0 : i32
    return %arg0, %c0_i32 : i32, i32
  }
  func.func @transform_1(%arg0: i32) -> (i32, i32) {
    %c0_i32 = arith.constant 0 : i32
    %c0_i32_0 = arith.constant 0 : i32
    return %arg0, %c0_i32 : i32, i32
  }
  func.func @transform_2(%arg0: i32) -> (i32, i32) {
    %c0_i32 = arith.constant 0 : i32
    %c0_i32_0 = arith.constant 0 : i32
    return %arg0, %c0_i32 : i32, i32
  }
  func.func @transform_3(%arg0: i32) -> (i32, i32, i32) {
    %c0_i32 = arith.constant 0 : i32
    %c0_i32_0 = arith.constant 0 : i32
    %c0_i32_1 = arith.constant 0 : i32
    return %arg0, %c0_i32, %c0_i32_0 : i32, i32, i32
  }
}

</mosaic_0001>

<bundles_post_ra>
// kernel: tpu_custom_call.1
= control target key start
LH: loop header
LB: loop body
LE: loop exit
PB: predicated region body
PF: predicated region fallthrough
CT: control target
= control target key end

     0   :  { %8 = vsyncpa [#allocation3], 0  ;;  %s671_s0 = inlined_call_operand.vmem [shape: f32[16,32], index: 0, kind: input, shape index: {}]   ;;  %s672_s1 = inlined_call_operand.hbm [shape: f32[16,32], index: 1, kind: input, shape index: {}]   ;;  %s673_s2 = inlined_call_operand.vmem [shape: f32[16,1], index: 2, kind: input, shape index: {}]   ;;  %s674_s3 = inlined_call_operand.hbm [shape: f32[2,1,32], index: 3, kind: output, shape index: {}]  }
   0x1   :  { %10 = vsyncpa [#allocation3 + $0x1], 0 }
   0x2   :  { %11 = vsyncpa [#allocation4], 0 }
   0x3   :  { %13 = vsyncpa [#allocation4 + $0x1], 0  ;;  %s521_s12 = smov 0   ;;  %s523_s13 = smov 0  }
   0x4   :  { %s525_s14 = smov 0   ;;  %s527_s15 = smov 0  }
   0x5 LB: > { %s542_s16 = sadd.s32 4294967295, %s496_s15   ;;  %s344_s17 = sadd.s32 4294967294, %s496_s15   ;;  %s496_s15 = sphi %s527_s15, %s691_s15   ;;  %s492_s14 = sphi %s525_s14, %s690_s14   ;;  %s488_s13 = sphi %s523_s13, %s689_s13   ;;  %s484_s12 = sphi %s521_s12, %s688_s12  }
   0x6   : > { %s546_s18 = sadd.s32 1, %s496_s15   ;;  %s52_s19 = sadd.s32 1, %s492_s14 }
   0x7   : > { %s49_s20 = ssub.s32 %s496_s15, %s546_s18  ;;  %p59_p0 = scmp.ne.s32.totalorder %s492_s14, %s488_s13 }
   0x8   : > { %p50_p1 = scmp.eq.s32.totalorder %s49_s20, 0  ;;  %p60_p2 = scmp.eq.s32.totalorder %s496_s15, 0 }
   0x9   : > { %p65_p3 = scmp.ne.s32.totalorder %s488_s13, %s484_s12  ;;  %p66_p4 = scmp.eq.s32.totalorder %s542_s16, 0 }
   0xa   : > { %s558_s21 = scalar_select %p50_p1, %s492_s14, %s52_s19  }
   0xb   : > { %p560_p5 = por %p60_p2, %p59_p0  ;;  %p564_p6 = por %p66_p4, %p65_p3 }
   0xc   : > { %p115_p7 = scmp.eq.s32.totalorder %s542_s16, 1  ;;  %p121_p8 = scmp.eq.s32.totalorder %s344_s17, 1 }
   0xd   : > { %s678_s23 = scalar_select %p564_p6, 1, 0 }
   0xe   : > { %p368_p10 = scmp.lt.s32.totalorder %s496_s15, 2  ;;  %p571_p11 = por %p115_p7, %p59_p0 }
   0xf   : > { %p575_p12 = por %p121_p8, %p65_p3  ;;  %s148_s26 = sand.u32 1, %s492_s14  }
  0x10   : > { %s679_s24 = scalar_select %p571_p11, 1, 0 }
  0x11   : > { %s680_s25 = scalar_select %p575_p12, 1, 0 }
  0x12   : > { %s348_s27 = sshll.u32 %s496_s15, 7  ;;  %s347_s28 = sshll.u32 %s148_s26, 3 }
  0x13   : > { %s584_s4 = scalar_lea.hbm %s672_s1, %s348_s27  ;;  %s152_s5 = scalar_lea.vmem [#allocation2], %s347_s28 }
  0x14   : > { %s159_s6 = sshll.u32 %s152_s5, 4  ;;  %p588_p13 = pnand %p368_p10, %p560_p5  ;;  %s592_s6 = int_to_ptr.vmem [resolvable:$true] %s159_s6 }
  0x15   : > { %s149_s8 = scalar_lea.sflag [#allocation3], %s148_s26  ;;  %s404_s9 = scalar_lea.hbm %s584_s4, 128 }
  0x16   : > { %p405_p2 = scmp.ne.s32.totalorder %s584_s4, %s404_s9  ;;  %p406_p3 = pneg %p588_p13 }
  0x17   : > { %s409_s17 = scalar_lea.hbm %s672_s1, 256  ;;  %p410_p5 = scmp.lt.s32.totalorder %s584_s4, %s672_s1 }
  0x18   : > { %p407_p4 = pnand %p406_p3, %p405_p2  ;;  %p411_p8 = scmp.lt.s32.totalorder %s409_s17, %s404_s9 }
  0x1a   : > { %p408_p7 = pneg %p407_p4  ;;  %p412_p10 = por %p411_p8, %p410_p5 }
  0x1c   : > { %p413_p9 = pnand %p412_p10, %p408_p7 }
  0x1e   : > { %416 = shalt.err (!%p413_p9)
}
  0x1f   : > { %s417_s22 = scalar_lea.vmem %s592_s6, 128  ;;  %s498_s26 = smov [#allocation2]  }
  0x20   : > { %p418_p0 = scmp.ne.s32.totalorder %s592_s6, %s417_s22  ;;  %s422_s27 = sshll.u32 %s498_s26, 4  ;;  %s423_s27 = int_to_ptr.vmem [resolvable:$false] %s422_s27 }
  0x21   : > { %s424_s28 = scalar_lea.vmem %s423_s27, 256  ;;  %p425_p4 = scmp.lt.s32.totalorder %s592_s6, %s423_s27 }
  0x22   : > { %p420_p1 = pnand %p418_p0, %p406_p3  ;;  %p426_p12 = scmp.lt.s32.totalorder %s424_s28, %s417_s22 }
  0x24   : > { %p421_p2 = pneg %p420_p1  ;;  %p427_p11 = por %p426_p12, %p425_p4 }
  0x26   : > { %p428_p6 = pnand %p427_p11, %p421_p2 }
  0x28   : > { %431 = shalt.err (!%p428_p6)
}
  0x29   : > { %363 = dma.hbm_to_vmem [thread:$0]  (!%p588_p13), %s584_s4, 128, %s592_s6, %s149_s8  }
  0x2a   : > { %p682_p9 = scmp.lt.s32.totalorder %s496_s15, 3  ;;  %p683_p7 = scmp.ge.s32.totalorder %s496_s15, 1 }
  0x2c   : > { %p172_p0 = pnand %p683_p7, %p682_p9 }
  0x2d   : > { %s619_s29 = sand.u32 (!%p172_p0), 1, %s488_s13   ;;  %p684_p6 = scmp.ne.s32.totalorder (!%p172_p0), %s678_s23, 0 }
  0x2e   : > { %175 = sbr.rel (%p172_p0) target bundleno = 213 (0xd5), region = 32  ;;  %s350_s30 = sshll.u32 (!%p172_p0), %s619_s29, 3 }
  0x2f   : > { %s178_s5 = scalar_lea.sflag (!%p172_p0), [#allocation3], %s619_s29  ;;  %s181_s9 = scalar_lea.vmem (!%p172_p0), [#allocation2], %s350_s30 }
  0x33   : > { %475 = dma.done.wait (%p684_p6), %s178_s5, 128  }
  0x34   : > { %477 = vsyncadd (%p684_p6), %s178_s5, 4294967168  ;;  %p211_p11 = scmp.lt.s32.totalorder %s542_s16, 1  ;;  %v499_v0 = vmov 0   ;;  %v220_v4 = vld [vmem:[%s181_s9] sm:$0xff]  ;;  %vm231_vm1 = vcmask 261120   ;;  %s353_s19 = sshll.u32 %s542_s16, 4 }
  0x35   : > { %403 = vset.pattern.permute.xlu0 %v499_v0  ;;  %s210_s20 = scalar_lea.vmem [#allocation5], %s619_s29  ;;  %vm239_vm3 = vcmask 253952   ;;  %s252_s28 = scalar_lea.hbm %s674_s3, %s353_s19 }
  0x36   : > { %s212_s4 = scalar_select %p211_p11, %s542_s16, 1 }
  0x37   : > { %s254_s22 = sshll.u32 %s210_s20, 4  ;;  %s242_s30 = scalar_lea.sflag [#allocation4], %s619_s29  ;;  %s255_s22 = int_to_ptr.vmem [resolvable:$true] %s254_s22 }
  0x38   : > { %s351_s6 = sshll.u32 %s212_s4, 3  ;;  %s432_s5 = scalar_lea.vmem %s255_s22, 16 }
  0x39   : > { %s218_s10 = scalar_lea.vmem %s673_s2, %s351_s6  ;;  %s214_s23 = scalar_lea.vmem %s671_s0, %s351_s6 }
  0x3a   : > { %v221_v1 = vld [vmem:[%s218_s10] sm:$0xff]  ;;  %p433_p12 = scmp.ne.s32.totalorder %s255_s22, %s432_s5  ;;  %p685_p13 = scmp.ne.s32.totalorder %s679_s24, 0 }
  0x3b   : > { %vm224_vm0 = vcmp.gt.f32.partialorder %v221_v1, 0.0  ;;  %v219_v3 = vld [vmem:[%s214_s23] sm:$0xff]  ;;  %s500_s9 = smov [#allocation5]  }
  0x3c   : > { %v225_v2 = vsel %vm224_vm0, 1, %v499_v0  ;;  %v222_v5 = vsub.f32 %v219_v3, %v220_v4  ;;  %p434_p1 = pnand %p433_p12, %p685_p13  ;;  %s436_s4 = sshll.u32 %s500_s9, 4  ;;  %s437_s4 = int_to_ptr.vmem [resolvable:$false] %s436_s4 }
  0x3d   : > { %227 = vperm.xlu0 %403, %v225_v2   ;;  %s438_s16 = scalar_lea.vmem %s437_s4, 32  ;;  %p439_p5 = scmp.lt.s32.totalorder %s255_s22, %s437_s4 }
  0x3e   : > { %v223_v6 = vmul.f32 %v222_v5, %v222_v5  ;;  %p435_p3 = pneg %p434_p1  ;;  %p440_p8 = scmp.lt.s32.totalorder %s438_s16, %s432_s5 }
  0x40   : > { %p441_p10 = por %p440_p8, %p439_p5 }
  0x42   : > { %p442_p2 = pnand %p441_p10, %p435_p3 }
  0xb8   : > { %v228_v7 = vpop.permute.xlu0 %227 }
  0xb9   : > { %vm229_vm2 = vcmp.eq.s32.totalorder %v228_v7, 1 }
  0xba   : > { %v230_v8 = vsel %vm229_vm2, %v223_v6, 0.0 }
  0xbb   : > { %v232_v9 = vsel %vm231_vm1, %v230_v8, 0.0 }
  0xbc   : > { %v233_v10 = vrot.slane %v232_v9, 4 }
  0xbe   : > { %v234_v11 = vadd.f32 %v233_v10, %v232_v9 }
  0xc0   : > { %v235_v12 = vrot.slane %v234_v11, 2 }
  0xc2   : > { %v236_v13 = vadd.f32 %v235_v12, %v234_v11 }
  0xc4   : > { %v237_v14 = vrot.slane %v236_v13, 1 }
  0xc6   : > { %v238_v15 = vadd.f32 %v237_v14, %v236_v13 }
  0xc8   : > { %240 = vst.msk [vmem:[%s210_s20] sm:$0x1] %vm239_vm3, %v238_v15 }
  0xc9   : > { %445 = shalt.err (!%p442_p2)
}
  0xca   : > { %s446_s6 = scalar_lea.hbm %s252_s28, 16  ;;  %s450_s8 = scalar_lea.hbm %s674_s3, 32 }
  0xcb   : > { %p447_p4 = scmp.ne.s32.totalorder %s252_s28, %s446_s6  ;;  %p451_p0 = scmp.lt.s32.totalorder %s252_s28, %s674_s3 }
  0xcc   : > { %p452_p6 = scmp.lt.s32.totalorder %s450_s8, %s446_s6 }
  0xcd   : > { %p448_p9 = pnand %p447_p4, %p685_p13 }
  0xce   : > { %p453_p11 = por %p452_p6, %p451_p0 }
  0xcf   : > { %p449_p7 = pneg %p448_p9 }
  0xd1   : > { %p454_p12 = pnand %p453_p11, %p449_p7 }
  0xd3   : > { %457 = shalt.err (!%p454_p12)
}
  0xd4   : > { %358 = dma.vmem_to_hbm [thread:$0]  (%p685_p13), %s255_s22, 16, %s252_s28, %s242_s30  }
  0xd5 PF: > { %s266_s17 = sand.u32 1, %s484_s12   ;;  %p686_p1 = scmp.ne.s32.totalorder %s680_s25, 0 }
  0xd6   : > { %p687_p3 = scmp.ge.s32.totalorder %s496_s15, 2  ;;  %s267_s23 = scalar_lea.sflag [#allocation4], %s266_s17 }
  0xd8   : > { %p365_p5 = pnand %p687_p3, %p686_p1 }
  0xda   : > { %p366_p8 = pneg %p365_p5 }
  0xdc   : > { %479 = dma.done.wait (%p366_p8), %s267_s23, 16  }
  0xdd   : > { %481 = vsyncadd (%p366_p8), %s267_s23, 4294967280  ;;  %p16_p10 = scmp.ge.s32.totalorder %s546_s18, 4   ;;  %s688_s12 = smov %s488_s13 }
  0xde   : > { %s689_s13 = smov %s492_s14  ;;  %s690_s14 = smov %s558_s21 }
  0xdf   : > { %s691_s15 = smov %s546_s18  ;;  %18 = sbr.rel (!%p16_p10) target bundleno = 5 (0x5), region = 83 }
  0xe4   :  { %271 = vsyncpa [#allocation3], 1 }
  0xe5   :  { %273 = vsyncpa [#allocation3 + $0x1], 1 }
  0xe6   :  { %274 = vsyncpa [#allocation4], 1 }
  0xe7   :  { %276 = vsyncpa [#allocation4 + $0x1], 1 }

</bundles_post_ra>
